<compile_context>
chip_gen: v7x
topology: tpu7x:2x2x1
jax: 0.10.0
libtpu: 0.0.40
codegen_flags: <defaults>
</compile_context>

<pallas_src>
import functools

import jax
import jax.numpy as jnp
import numpy as np
from jax import lax
from jax.experimental import pallas as pl
from jax.experimental.pallas import tpu as pltpu


def _rec_kernel(x_ref, w1_ref, w21_ref, w22_ref, w3_ref, bias_ref, masks_ref,
                o_ref, *, k, pad, W, cmid, cout, mxu_dtype):
    """Fused Rec forward for one chunk of `nb` images.

    x_ref     : (Cin, L)          channel-major input, L = nb*H*W on the lanes
    w1_ref    : (Cmid, Cin)       conv1 1x1 weight * bn1 scale          (bf16)
    w21_ref   : (Cmid, k*Cmid)    conv2_1 (1,k) weight, tap-major * s21 (bf16)
    w22_ref   : (Cmid, k*Cmid)    conv2_2 (k,1) weight, tap-major * s22 (bf16)
    w3_ref    : (Cout, Cmid)      conv3 1x1 weight * bn3 scale          (bf16)
    bias_ref  : (3*Cmid+Cout, 1)  concatenated folded BN biases [b1;b21;b22;b3]
    masks_ref : (2k, L)           border masks: rows 0..k-1 along W, k..2k-1 along H
    o_ref     : (Cout, L)
    """
    L = x_ref.shape[1]

    b1 = bias_ref[0 * cmid:1 * cmid, :]
    b21 = bias_ref[1 * cmid:2 * cmid, :]
    b22 = bias_ref[2 * cmid:3 * cmid, :]
    b3 = bias_ref[3 * cmid:3 * cmid + cout, :]

    # ---- conv1 (1x1, BN scale folded into weights) + bias + ReLU ----
    x = x_ref[...].astype(mxu_dtype)                                   # (Cin, L)
    h = jnp.dot(w1_ref[...], x, preferred_element_type=jnp.float32)    # (Cmid, L)
    h = jnp.maximum(h + b1, 0.0)

    def sep_conv(h, w_ref, bias, mask_base, shift_unit):
        # Build the k shifted taps with XLU rolls + border masks, stack them
        # along the contraction dim and do ONE deep (Cmid, k*Cmid) matmul.
        taps = []
        for j in range(k):
            if j == pad:
                taps.append(h)                       # center tap: no roll, no mask
            else:
                shift = ((pad - j) * shift_unit) % L
                tap = pltpu.roll(h, shift=shift, axis=1)
                taps.append(tap * masks_ref[mask_base + j:mask_base + j + 1, :])
        stacked = jnp.concatenate(taps, axis=0).astype(mxu_dtype)      # (k*Cmid, L)
        out = jnp.dot(w_ref[...], stacked, preferred_element_type=jnp.float32)
        return jnp.maximum(out + bias, 0.0)

    # ---- conv2_1 ((1,k) along W) + bias + ReLU ----
    h = sep_conv(h, w21_ref, b21, 0, 1)
    # ---- conv2_2 ((k,1) along H) + bias + ReLU ----
    h = sep_conv(h, w22_ref, b22, k, W)

    # ---- conv3 (1x1) + bias (no activation) ----
    o = jnp.dot(w3_ref[...], h.astype(mxu_dtype),
                preferred_element_type=jnp.float32)                    # (Cout, L)
    o_ref[...] = (o + b3).astype(o_ref.dtype)


def _fold_bn(gamma, beta, mean, var, eps=1e-5):
    scale = gamma / jnp.sqrt(var + eps)
    bias = beta - mean * scale
    return scale, bias


def _pick_batch_block(n, hw, *, target_lanes=2048, min_steps=2):
    """Largest batch chunk whose lane width stays <= target_lanes while keeping
    at least `min_steps` grid steps (so v7x's two TensorCores both get work)."""
    best = 1
    for d in range(1, n + 1):
        if n % d:
            continue
        if d * hw > target_lanes:
            continue
        if n // d < min(min_steps, n):
            continue
        best = d
    return best


def rec_forward(x_nchw, params, *, k=3, stride=1, batch_block=None,
                mxu_dtype=jnp.bfloat16):
    """Rec.forward (stride == 1) via one fused Pallas kernel, NCHW in/out."""
    assert stride == 1, "stride > 1 path not implemented"
    assert k % 2 == 1, "even k would change output size / mask construction"
    N, Cin, H, W = x_nchw.shape
    HW = H * W
    pad = k // 2

    w1, w21, w22, w3 = params["w1"], params["w2_1"], params["w2_2"], params["w3"]
    Cmid, Cout = w1.shape[0], w3.shape[0]

    # Fold eval-mode BatchNorm into per-channel scale/bias; scales go into the
    # conv weights, only biases stay in-kernel.
    # TODO(synk): build_norm_layer assumed to be BatchNorm2d in eval mode.
    s1, b1 = _fold_bn(*params["bn1"])
    s21, b21 = _fold_bn(*params["bn2_1"])
    s22, b22 = _fold_bn(*params["bn2_2"])
    s3, b3 = _fold_bn(*params["bn3"])

    w1_k = (w1[:, :, 0, 0] * s1[:, None]).astype(mxu_dtype)             # (Cmid, Cin)
    w21_k = (jnp.transpose(w21[:, :, 0, :], (0, 2, 1)).reshape(Cmid, k * Cmid)
             * s21[:, None]).astype(mxu_dtype)                          # (Cmid, k*Cmid)
    w22_k = (jnp.transpose(w22[:, :, :, 0], (0, 2, 1)).reshape(Cmid, k * Cmid)
             * s22[:, None]).astype(mxu_dtype)                          # (Cmid, k*Cmid)
    w3_k = (w3[:, :, 0, 0] * s3[:, None]).astype(mxu_dtype)             # (Cout, Cmid)

    bias_all = jnp.concatenate([b1, b21, b22, b3]).reshape(-1, 1).astype(jnp.float32)

    # Batch chunk per grid step.
    nb = batch_block if batch_block is not None else _pick_batch_block(N, HW)
    assert N % nb == 0, "batch_block must divide the batch"
    L = nb * HW

    # Border masks for the shifted taps, tiled to the full nb*HW lane width so
    # roll wrap-around across image boundaries is zeroed exactly where
    # zero-padding would be.
    p_idx = np.arange(HW)
    wi, hi = p_idx % W, p_idx // W
    offs = np.arange(k) - pad
    maskw = ((wi[None, :] + offs[:, None] >= 0) & (wi[None, :] + offs[:, None] < W))
    maskh = ((hi[None, :] + offs[:, None] >= 0) & (hi[None, :] + offs[:, None] < H))
    masks = np.concatenate([maskw, maskh], axis=0).astype(np.float32)   # (2k, HW)
    masks = jnp.asarray(np.tile(masks, (1, nb)))                        # (2k, L)

    # Channel-major, lane-dense layout: (Cin, N*HW).
    xf = jnp.transpose(x_nchw.reshape(N, Cin, HW), (1, 0, 2)).reshape(Cin, N * HW)

    kernel = functools.partial(_rec_kernel, k=k, pad=pad, W=W,
                               cmid=Cmid, cout=Cout, mxu_dtype=mxu_dtype)

    def const_spec(shape):
        return pl.BlockSpec(shape, lambda i, _nd=len(shape): (0,) * _nd)

    out = pl.pallas_call(
        kernel,
        out_shape=jax.ShapeDtypeStruct((Cout, N * HW), x_nchw.dtype),
        grid_spec=pltpu.PrefetchScalarGridSpec(
            num_scalar_prefetch=0,
            grid=(N // nb,),
            in_specs=[
                pl.BlockSpec((Cin, L), lambda i: (0, i)),
                const_spec(w1_k.shape),
                const_spec(w21_k.shape),
                const_spec(w22_k.shape),
                const_spec(w3_k.shape),
                const_spec(bias_all.shape),
                const_spec(masks.shape),
            ],
            out_specs=pl.BlockSpec((Cout, L), lambda i: (0, i)),
        ),
        compiler_params=pltpu.CompilerParams(
            dimension_semantics=("parallel",),
            vmem_limit_bytes=32 * 1024 * 1024),
    )(xf, w1_k, w21_k, w22_k, w3_k, bias_all, masks)

    return jnp.transpose(out.reshape(Cout, N, HW), (1, 0, 2)).reshape(N, Cout, H, W)


def reference_forward(x_nchw, params, *, k=3, stride=1):
    """Pure-JAX (XLA conv) reference of the same forward pass."""
    eps = 1e-5
    pad = k // 2

    def bn(h, p):
        g, b, m, v = p
        inv = g / jnp.sqrt(v + eps)
        return h * inv[None, :, None, None] + (b - m * inv)[None, :, None, None]

    dn = ('NCHW', 'OIHW', 'NCHW')
    h = lax.conv_general_dilated(x_nchw, params["w1"], (1, 1), 'VALID',
                                 dimension_numbers=dn)
    h = jax.nn.relu(bn(h, params["bn1"]))
    h = lax.conv_general_dilated(h, params["w2_1"], (1, stride),
                                 [(0, 0), (pad, pad)], dimension_numbers=dn)
    h = jax.nn.relu(bn(h, params["bn2_1"]))
    h = lax.conv_general_dilated(h, params["w2_2"], (stride, 1),
                                 [(pad, pad), (0, 0)], dimension_numbers=dn)
    h = jax.nn.relu(bn(h, params["bn2_2"]))
    h = lax.conv_general_dilated(h, params["w3"], (1, 1), 'VALID',
                                 dimension_numbers=dn)
    h = bn(h, params["bn3"])
    return h


def init_params(key, inplanes, outplanes, *, t=6, k=3):
    cmid = inplanes * t
    keys = jax.random.split(key, 20)

    def bn_init(k1, k2, k3, k4, c):
        gamma = 1.0 + 0.1 * jax.random.normal(k1, (c,), jnp.float32)
        beta = 0.05 * jax.random.normal(k2, (c,), jnp.float32)
        mean = 0.01 * jax.random.normal(k3, (c,), jnp.float32)
        var = 1.0 + 0.1 * jax.random.uniform(k4, (c,), jnp.float32)
        return (gamma, beta, mean, var)

    return {
        "w1": 0.2 * jax.random.normal(keys[0], (cmid, inplanes, 1, 1), jnp.float32),
        "bn1": bn_init(keys[1], keys[2], keys[3], keys[4], cmid),
        "w2_1": 0.2 * jax.random.normal(keys[5], (cmid, cmid, 1, k), jnp.float32),
        "bn2_1": bn_init(keys[6], keys[7], keys[8], keys[9], cmid),
        "w2_2": 0.2 * jax.random.normal(keys[10], (cmid, cmid, k, 1), jnp.float32),
        "bn2_2": bn_init(keys[11], keys[12], keys[13], keys[14], cmid),
        "w3": 0.2 * jax.random.normal(keys[15], (outplanes, cmid, 1, 1), jnp.float32),
        "bn3": bn_init(keys[16], keys[17], keys[18], keys[19], outplanes),
    }


if __name__ == "__main__":
    key = jax.random.PRNGKey(0)
    kx, kp = jax.random.split(key)

    # Small shapes consistent with Rec defaults: stride=1, k=3, t=6.
    N, Cin, H, W = 2, 4, 16, 16
    t, outplanes, k = 6, 8, 3

    x = jax.random.normal(kx, (N, Cin, H, W), jnp.float32)
    params = init_params(kp, Cin, outplanes, t=t, k=k)

    ref = reference_forward(x, params, k=k)

    # bf16 MXU operands with f32 accumulation -> use a 2e-2 tolerance.
    tol = dict(rtol=2e-2, atol=2e-2)

    # Path 1: auto-picked batch chunk (keeps >= 2 parallel grid steps).
    out = jax.block_until_ready(rec_forward(x, params, k=k))
    assert out.shape == (N, outplanes, H, W)
    np.testing.assert_allclose(np.asarray(out), np.asarray(ref), **tol)

    # Path 2: full-batch folding (all images in one fat lane-dense grid step),
    # exercising the tiled-mask / cross-image roll correctness.
    out2 = jax.block_until_ready(rec_forward(x, params, k=k, batch_block=N))
    np.testing.assert_allclose(np.asarray(out2), np.asarray(ref), **tol)

    print("KERNEL_OK")
</pallas_src>

<mosaic_0001>
module attributes {stable_mosaic.version = 11 : i64} {
  func.func @_rec_kernel(%arg0: i32, %arg1: memref<4x256xf32, #tpu.memory_space<vmem>>, %arg2: memref<24x4xbf16, #tpu.memory_space<vmem>>, %arg3: memref<24x72xbf16, #tpu.memory_space<vmem>>, %arg4: memref<24x72xbf16, #tpu.memory_space<vmem>>, %arg5: memref<8x24xbf16, #tpu.memory_space<vmem>>, %arg6: memref<80x1xf32, #tpu.memory_space<vmem>>, %arg7: memref<6x256xf32, #tpu.memory_space<vmem>>, %arg8: memref<8x256xf32, #tpu.memory_space<vmem>>) attributes {dimension_semantics = [#tpu.dimension_semantics<parallel>], iteration_bounds = array<i64: 2>, scalar_prefetch = 0 : i64, scratch_operands = 0 : i64, tpu.core_type = #tpu.core_type<tc>, window_params = [{transform_indices = @transform_0, window_bounds = array<i64: 4, 256>}, {pipeline_mode = #tpu.pipeline_mode<synchronous>, transform_indices = @transform_1, window_bounds = array<i64: 24, 4>}, {pipeline_mode = #tpu.pipeline_mode<synchronous>, transform_indices = @transform_2, window_bounds = array<i64: 24, 72>}, {pipeline_mode = #tpu.pipeline_mode<synchronous>, transform_indices = @transform_3, window_bounds = array<i64: 24, 72>}, {pipeline_mode = #tpu.pipeline_mode<synchronous>, transform_indices = @transform_4, window_bounds = array<i64: 8, 24>}, {pipeline_mode = #tpu.pipeline_mode<synchronous>, transform_indices = @transform_5, window_bounds = array<i64: 80, 1>}, {pipeline_mode = #tpu.pipeline_mode<synchronous>, transform_indices = @transform_6, window_bounds = array<i64: 6, 256>}, {transform_indices = @transform_7, window_bounds = array<i64: 8, 256>}]} {
    %c0 = arith.constant 0 : index
    %c0_0 = arith.constant 0 : index
    %0 = vector.load %arg6[%c0, %c0_0] : memref<80x1xf32, #tpu.memory_space<vmem>>, vector<24x1xf32>
    %c24 = arith.constant 24 : index
    %c0_1 = arith.constant 0 : index
    %1 = vector.load %arg6[%c24, %c0_1] : memref<80x1xf32, #tpu.memory_space<vmem>>, vector<24x1xf32>
    %c48 = arith.constant 48 : index
    %c0_2 = arith.constant 0 : index
    %2 = vector.load %arg6[%c48, %c0_2] : memref<80x1xf32, #tpu.memory_space<vmem>>, vector<24x1xf32>
    %c72 = arith.constant 72 : index
    %c0_3 = arith.constant 0 : index
    %3 = vector.load %arg6[%c72, %c0_3] : memref<80x1xf32, #tpu.memory_space<vmem>>, vector<8x1xf32>
    %c0_4 = arith.constant 0 : index
    %c0_5 = arith.constant 0 : index
    %4 = vector.load %arg1[%c0_4, %c0_5] : memref<4x256xf32, #tpu.memory_space<vmem>>, vector<4x256xf32>
    %5 = arith.truncf %4 : vector<4x256xf32> to vector<4x256xbf16>
    %c0_6 = arith.constant 0 : index
    %c0_7 = arith.constant 0 : index
    %6 = vector.load %arg2[%c0_6, %c0_7] : memref<24x4xbf16, #tpu.memory_space<vmem>>, vector<24x4xbf16>
    %cst = arith.constant dense<0.000000e+00> : vector<24x256xf32>
    %7 = tpu.matmul %6, %5, %cst {dimension_numbers = #tpu.dot_dimension_numbers<[1], [0], [0], [1], [0, 0, 1, 1], [], []>} : vector<24x4xbf16>, vector<4x256xbf16>, vector<24x256xf32> -> vector<24x256xf32>
    %8 = vector.broadcast %0 : vector<24x1xf32> to vector<24x256xf32>
    %9 = arith.addf %7, %8 : vector<24x256xf32>
    %cst_8 = arith.constant 0.000000e+00 : f32
    %10 = vector.broadcast %cst_8 : f32 to vector<24x256xf32>
    %11 = arith.maximumf %9, %10 : vector<24x256xf32>
    %c1_i32 = arith.constant 1 : i32
    %12 = tpu.dynamic_rotate %11 by %c1_i32 dim 1 : vector<24x256xf32>, i32 -> vector<24x256xf32>
    %c0_9 = arith.constant 0 : index
    %c0_10 = arith.constant 0 : index
    %13 = vector.load %arg7[%c0_9, %c0_10] : memref<6x256xf32, #tpu.memory_space<vmem>>, vector<1x256xf32>
    %14 = vector.broadcast %13 : vector<1x256xf32> to vector<24x256xf32>
    %15 = arith.mulf %12, %14 : vector<24x256xf32>
    %c255_i32 = arith.constant 255 : i32
    %16 = tpu.dynamic_rotate %11 by %c255_i32 dim 1 : vector<24x256xf32>, i32 -> vector<24x256xf32>
    %c2 = arith.constant 2 : index
    %c0_11 = arith.constant 0 : index
    %17 = vector.load %arg7[%c2, %c0_11] : memref<6x256xf32, #tpu.memory_space<vmem>>, vector<1x256xf32>
    %18 = vector.broadcast %17 : vector<1x256xf32> to vector<24x256xf32>
    %19 = arith.mulf %16, %18 : vector<24x256xf32>
    %20 = tpu.concatenate %15, %11, %19 in 0 : vector<24x256xf32>, vector<24x256xf32>, vector<24x256xf32> -> vector<72x256xf32>
    %21 = arith.truncf %20 : vector<72x256xf32> to vector<72x256xbf16>
    %c0_12 = arith.constant 0 : index
    %c0_13 = arith.constant 0 : index
    %22 = vector.load %arg3[%c0_12, %c0_13] : memref<24x72xbf16, #tpu.memory_space<vmem>>, vector<24x72xbf16>
    %cst_14 = arith.constant dense<0.000000e+00> : vector<24x256xf32>
    %23 = tpu.matmul %22, %21, %cst_14 {dimension_numbers = #tpu.dot_dimension_numbers<[1], [0], [0], [1], [0, 0, 1, 1], [], []>} : vector<24x72xbf16>, vector<72x256xbf16>, vector<24x256xf32> -> vector<24x256xf32>
    %24 = vector.broadcast %1 : vector<24x1xf32> to vector<24x256xf32>
    %25 = arith.addf %23, %24 : vector<24x256xf32>
    %cst_15 = arith.constant 0.000000e+00 : f32
    %26 = vector.broadcast %cst_15 : f32 to vector<24x256xf32>
    %27 = arith.maximumf %25, %26 : vector<24x256xf32>
    %c16_i32 = arith.constant 16 : i32
    %28 = tpu.dynamic_rotate %27 by %c16_i32 dim 1 : vector<24x256xf32>, i32 -> vector<24x256xf32>
    %c3 = arith.constant 3 : index
    %c0_16 = arith.constant 0 : index
    %29 = vector.load %arg7[%c3, %c0_16] : memref<6x256xf32, #tpu.memory_space<vmem>>, vector<1x256xf32>
    %30 = vector.broadcast %29 : vector<1x256xf32> to vector<24x256xf32>
    %31 = arith.mulf %28, %30 : vector<24x256xf32>
    %c240_i32 = arith.constant 240 : i32
    %32 = tpu.dynamic_rotate %27 by %c240_i32 dim 1 : vector<24x256xf32>, i32 -> vector<24x256xf32>
    %c5 = arith.constant 5 : index
    %c0_17 = arith.constant 0 : index
    %33 = vector.load %arg7[%c5, %c0_17] : memref<6x256xf32, #tpu.memory_space<vmem>>, vector<1x256xf32>
    %34 = vector.broadcast %33 : vector<1x256xf32> to vector<24x256xf32>
    %35 = arith.mulf %32, %34 : vector<24x256xf32>
    %36 = tpu.concatenate %31, %27, %35 in 0 : vector<24x256xf32>, vector<24x256xf32>, vector<24x256xf32> -> vector<72x256xf32>
    %37 = arith.truncf %36 : vector<72x256xf32> to vector<72x256xbf16>
    %c0_18 = arith.constant 0 : index
    %c0_19 = arith.constant 0 : index
    %38 = vector.load %arg4[%c0_18, %c0_19] : memref<24x72xbf16, #tpu.memory_space<vmem>>, vector<24x72xbf16>
    %cst_20 = arith.constant dense<0.000000e+00> : vector<24x256xf32>
    %39 = tpu.matmul %38, %37, %cst_20 {dimension_numbers = #tpu.dot_dimension_numbers<[1], [0], [0], [1], [0, 0, 1, 1], [], []>} : vector<24x72xbf16>, vector<72x256xbf16>, vector<24x256xf32> -> vector<24x256xf32>
    %40 = vector.broadcast %2 : vector<24x1xf32> to vector<24x256xf32>
    %41 = arith.addf %39, %40 : vector<24x256xf32>
    %cst_21 = arith.constant 0.000000e+00 : f32
    %42 = vector.broadcast %cst_21 : f32 to vector<24x256xf32>
    %43 = arith.maximumf %41, %42 : vector<24x256xf32>
    %c0_22 = arith.constant 0 : index
    %c0_23 = arith.constant 0 : index
    %44 = vector.load %arg5[%c0_22, %c0_23] : memref<8x24xbf16, #tpu.memory_space<vmem>>, vector<8x24xbf16>
    %45 = arith.truncf %43 : vector<24x256xf32> to vector<24x256xbf16>
    %cst_24 = arith.constant dense<0.000000e+00> : vector<8x256xf32>
    %46 = tpu.matmul %44, %45, %cst_24 {dimension_numbers = #tpu.dot_dimension_numbers<[1], [0], [0], [1], [0, 0, 1, 1], [], []>} : vector<8x24xbf16>, vector<24x256xbf16>, vector<8x256xf32> -> vector<8x256xf32>
    %47 = vector.broadcast %3 : vector<8x1xf32> to vector<8x256xf32>
    %48 = arith.addf %46, %47 : vector<8x256xf32>
    %c0_25 = arith.constant 0 : index
    %c0_26 = arith.constant 0 : index
    %49 = vector.load %arg8[%c0_25, %c0_26] : memref<8x256xf32, #tpu.memory_space<vmem>>, vector<8x256xf32>
    tpu.vector_store %arg8[%c0_25, %c0_26], %48 {strides = array<i32>} : memref<8x256xf32, #tpu.memory_space<vmem>>, vector<8x256xf32>,
    return
  }
  func.func @transform_0(%arg0: i32) -> (i32, i32) {
    %c0_i32 = arith.constant 0 : i32
    %c0_i32_0 = arith.constant 0 : i32
    return %c0_i32, %arg0 : i32, i32
  }
  func.func @transform_1(%arg0: i32) -> (i32, i32) {
    %c0_i32 = arith.constant 0 : i32
    %c0_i32_0 = arith.constant 0 : i32
    %c0_i32_1 = arith.constant 0 : i32
    return %c0_i32, %c0_i32_0 : i32, i32
  }
  func.func @transform_2(%arg0: i32) -> (i32, i32) {
    %c0_i32 = arith.constant 0 : i32
    %c0_i32_0 = arith.constant 0 : i32
    %c0_i32_1 = arith.constant 0 : i32
    return %c0_i32, %c0_i32_0 : i32, i32
  }
  func.func @transform_3(%arg0: i32) -> (i32, i32) {
    %c0_i32 = arith.constant 0 : i32
    %c0_i32_0 = arith.constant 0 : i32
    %c0_i32_1 = arith.constant 0 : i32
    return %c0_i32, %c0_i32_0 : i32, i32
  }
  func.func @transform_4(%arg0: i32) -> (i32, i32) {
    %c0_i32 = arith.constant 0 : i32
    %c0_i32_0 = arith.constant 0 : i32
    %c0_i32_1 = arith.constant 0 : i32
    return %c0_i32, %c0_i32_0 : i32, i32
  }
  func.func @transform_5(%arg0: i32) -> (i32, i32) {
    %c0_i32 = arith.constant 0 : i32
    %c0_i32_0 = arith.constant 0 : i32
    %c0_i32_1 = arith.constant 0 : i32
    return %c0_i32, %c0_i32_0 : i32, i32
  }
  func.func @transform_6(%arg0: i32) -> (i32, i32) {
    %c0_i32 = arith.constant 0 : i32
    %c0_i32_0 = arith.constant 0 : i32
    %c0_i32_1 = arith.constant 0 : i32
    return %c0_i32, %c0_i32_0 : i32, i32
  }
  func.func @transform_7(%arg0: i32) -> (i32, i32) {
    %c0_i32 = arith.constant 0 : i32
    %c0_i32_0 = arith.constant 0 : i32
    return %c0_i32, %arg0 : i32, i32
  }
}

</mosaic_0001>

<bundles_post_ra>
// kernel: tpu_custom_call.1
= control target key start
LH: loop header
LB: loop body
LE: loop exit
PB: predicated region body
PF: predicated region fallthrough
CT: control target
= control target key end

     0   :  { %12 = vsyncpa [#allocation3], 0  ;;  %s1400_s0 = inlined_call_operand.vmem [shape: f32[4,512], index: 0, kind: input, shape index: {}]   ;;  %s1401_s1 = inlined_call_operand.vmem [shape: bf16[24,4], index: 1, kind: input, shape index: {}]   ;;  %s1402_s2 = inlined_call_operand.vmem [shape: bf16[24,72], index: 2, kind: input, shape index: {}]   ;;  %s1403_s3 = inlined_call_operand.vmem [shape: bf16[24,72], index: 3, kind: input, shape index: {}]   ;;  %s1404_s4 = inlined_call_operand.vmem [shape: bf16[8,24], index: 4, kind: input, shape index: {}]   ;;  %s1405_s5 = inlined_call_operand.vmem [shape: f32[80,1], index: 5, kind: input, shape index: {}]   ;;  %s1406_s6 = inlined_call_operand.vmem [shape: f32[6,256], index: 6, kind: input, shape index: {}]   ;;  %s1407_s7 = inlined_call_operand.hbm [shape: f32[8,512], index: 7, kind: output, shape index: {}]  }
   0x1   :  { %14 = vsyncpa [#allocation3 + $0x1], 0  ;;  %s1092_s24 = smov 0   ;;  %s1094_s25 = smov 0  }
   0x2   :  { %s1096_s26 = smov 0   ;;  %s1098_s27 = smov 0  }
   0x3 LB: > { %s1113_s28 = sadd.s32 4294967295, %s1044_s27   ;;  %s896_s29 = sadd.s32 4294967294, %s1044_s27   ;;  %s1044_s27 = sphi %s1098_s27, %s1413_s27   ;;  %s1040_s26 = sphi %s1096_s26, %s1412_s26   ;;  %s1036_s25 = sphi %s1094_s25, %s1411_s25   ;;  %s1032_s24 = sphi %s1092_s24, %s1410_s24  }
   0x4   : > { %s1117_s30 = sadd.s32 1, %s1044_s27   ;;  %s179_s8 = sadd.s32 1, %s1040_s26 }
   0x5   : > { %s176_s9 = ssub.s32 %s1044_s27, %s1117_s30  ;;  %p189_p0 = scmp.ne.s32.totalorder %s1040_s26, %s1036_s25 }
   0x6   : > { %p177_p1 = scmp.eq.s32.totalorder %s176_s9, 0  ;;  %p190_p2 = scmp.eq.s32.totalorder %s1113_s28, 1 }
   0x7   : > { %p195_p3 = scmp.ne.s32.totalorder %s1036_s25, %s1032_s24  ;;  %p196_p4 = scmp.eq.s32.totalorder %s896_s29, 1 }
   0x8   : > { %s1128_s10 = scalar_select %p177_p1, %s1040_s26, %s179_s8  }
   0x9   : > { %p1130_p5 = por %p190_p2, %p189_p0  ;;  %p1134_p6 = por %p196_p4, %p195_p3 }
   0xa   : > { %p899_p7 = scmp.ge.s32.totalorder %s1044_s27, 1  ;;  %p241_p8 = scmp.lt.s32.totalorder %s1044_s27, 3 }
   0xc   : > { %p242_p9 = pnand %p899_p7, %p241_p8 }
   0xd   : > { %s901_s13 = sshll.u32 (!%p242_p9), %s1113_s28, 1  ;;  %v1046_v0 = vmov (!%p242_p9), 0   ;;  %v281_v1 = vld [vmem:[%s1405_s5] sm:$0xff] (!%p242_p9)  ;;  %v282_v2 = vld [vmem:[%s1405_s5 + $0x8] sm:$0xff] (!%p242_p9)  ;;  %v283_v3 = vld [vmem:[%s1405_s5 + $0x10] sm:$0xff] (!%p242_p9)  ;;  %vm330_vm0 = vcmask (!%p242_p9), 1041408   ;;  %v406_v39 = vlaneseq (!%p242_p9) }
   0xe   : > { %245 = sbr.rel (%p242_p9) target bundleno = 1217 (0x4c1), region = 48  ;;  %p274_p10 = scmp.lt.s32.totalorder (!%p242_p9), %s901_s13, 3  ;;  %369 = vmatprep.mubr.bf16.mxu0 (!%p242_p9), %v1046_v0  ;;  %973 = vset.pattern.permute.xlu0 (!%p242_p9), %v1046_v0  ;;  %v976_v9 = vld [vmem:[%s1401_s1] sm:$0xff] (!%p242_p9)   ;;  %vm323_vm1 = vcmask (!%p242_p9), 31744   ;;  %v977_v10 = vld [vmem:[%s1401_s1 + $0x8] ss:$0 sps:$4 sm:$0xff] (!%p242_p9)  }
   0xf   : > { %974 = vset.pattern.permute.xlu1 (!%p242_p9), %v1046_v0  ;;  %553 = vmatprep.mubr.bf16.mxu1 (!%p242_p9), %v1046_v0  ;;  %s1047_s14 = smov (!%p242_p9), 1   ;;  %s1048_s15 = smov (!%p242_p9), 127   ;;  %v284_v36 = vld [vmem:[%s1405_s5 + $0x18] sm:$0xff] (!%p242_p9)  ;;  %v285_v37 = vld [vmem:[%s1405_s5 + $0x20] sm:$0xff] (!%p242_p9)  ;;  %v286_v38 = vld [vmem:[%s1405_s5 + $0x28] sm:$0xff] (!%p242_p9)  ;;  %v418_v40 = vshrl.u32 (!%p242_p9), %v406_v39, 7 }
  0x10   : > { %302 = vperm.xlu0 (!%p242_p9), %973, %v281_v1   ;;  %312 = vperm.xlu1 (!%p242_p9), %974, %v283_v3   ;;  %v1202_v41 = vand.u32 (!%p242_p9), 127, %v406_v39  ;;  %v415_v45 = vld [vmem:[%s1406_s6] ss:$8 sm:$0x3] (!%p242_p9)  ;;  %vm514_vm4 = vcmask (!%p242_p9), 1043456   ;;  %vm507_vm5 = vcmask (!%p242_p9), 588800  }
  0x11   : > { %v1204_v43 = vsub.s32 (!%p242_p9), 0, %v418_v40  ;;  %v1206_v44 = vsub.s32 (!%p242_p9), 1, %v418_v40  ;;  %s1049_s16 = smov (!%p242_p9), 16   ;;  %s1050_s17 = smov (!%p242_p9), 112   ;;  %vm769_vm8 = vcmask (!%p242_p9), 195584  }
  0x12   : > { %vm408_vm2 = vcmp.lt.s32.totalorder (!%p242_p9), %v1202_v41, 1  ;;  %vm445_vm3 = vcmp.lt.s32.totalorder (!%p242_p9), %v1202_v41, 127  ;;  %vm590_vm6 = vcmp.lt.s32.totalorder (!%p242_p9), %v1202_v41, 16  ;;  %vm628_vm7 = vcmp.lt.s32.totalorder (!%p242_p9), %v1202_v41, 112  ;;  %v981_v41 = vld [vmem:[%s1403_s3 + $0x8] ss:$0 sps:$4 sm:$0xff] (!%p242_p9)  }
  0x13   : > { %v420_v47 = vrot.slane (!%p242_p9), %v415_v45, %v1204_v43  ;;  %v424_v49 = vrot.slane (!%p242_p9), %v415_v45, %v1206_v44  ;;  %s270_s22 = sand.u32 (!%p242_p9), 1, %s1036_s25   ;;  %s928_s29 = sshll.u32 (!%p242_p9), %s1113_s28, 8 }
  0x14   : > { %307 = vperm.xlu0 (!%p242_p9), %973, %v282_v2   ;;  %s823_s28 = scalar_lea.sflag (!%p242_p9), [#allocation3], %s270_s22 }
  0x15   : > { %s1415_s13 = smov (!%p274_p10, %s901_s13), 3 }
  0x16   : > { %s902_s20 = sshll.u32 %s1415_s13, 2 }
  0x17   : > { %s277_s23 = scalar_lea.vmem %s1400_s0, %s902_s20 }
  0x18   : > { %v291_v4 = vld [vmem:[%s277_s23] sm:$0xff]  ;;  %s900_s23 = sshll.u32 %s270_s22, 4 }
  0x19   : > { %v293_v5 = vcombine.high %v291_v4, %v291_v4  ;;  %v295_v6 = vpack.c.bf16 %v291_v4, %v291_v4  ;;  %s272_s8 = scalar_lea.vmem [#allocation2], %s900_s23 }
  0x1a   : > { %s837_s9 = sshll.u32 %s272_s8, 4  ;;  %s1360_s9 = int_to_ptr.vmem [resolvable:$true] %s837_s9 }
  0x1b   : > { %v296_v7 = vpack.c.bf16 %v293_v5, %v293_v5  ;;  %v332_v8 = vsel %vm330_vm0, %v295_v6, 0  ;;  %v908_v5 = vld [vmem:[%s1406_s6 + $0x2] ss:$8 sm:$0x3] }
  0x1d   : > { %905 = vmatprep.subr.msk.bf16.mxu0 %vm330_vm0, %v296_v7 }
  0x1e   : > { %338 = vmatpush1.bf16.msra.mxu0 %v332_v8 }
  0x21   : > { %906 = vmatmul.mubr.msk.bf16.vlgmr.msra.gmra.mrb[0].mxu0 %vm323_vm1, %v976_v9  ;;  %v458_v9 = vrot.slane %v908_v5, %v1204_v43 }
  0x22   : > { %379 = vmatprep.mubr.bf16.mxu0 %v1046_v0 }
  0x29   : > { %907 = vmatmul.mubr.msk.bf16.gmra.mrb[4].mxu0 %vm323_vm1, %v977_v10  ;;  %v462_v10 = vrot.slane %v908_v5, %v1206_v44 }
  0x2a   : > { %734 = vmatprep.mubr.bf16.mxu0 %v1046_v0 }
  0x8f   : > { %v303_v11 = vpop.permute.xlu0 %302  ;;  %v313_v23 = vpop.permute.xlu1 %312 }
  0x93   : > { %v308_v15 = vpop.permute.xlu0 %307 }
  0xf4   : > { %v371_v12 = vpop.f32.mrb[0].mxu0 }
  0xf5   : > { %v372_v13 = vadd.f32 %v371_v12, %v303_v11  ;;  %v373_v14 = vpop.f32.mrb[1].mxu0 }
  0xf6   : > { %v375_v16 = vpop.f32.mrb[2].mxu0  ;;  %v374_v18 = vadd.f32 %v373_v14, %v303_v11 }
  0xf7   : > { %v1165_v17 = vmax.f32 %v372_v13, 0.0  ;;  %v376_v19 = vadd.f32 %v375_v16, %v308_v15  ;;  %v377_v20 = vpop.f32.mrb[3].mxu0 }
  0xf8   : > { %v378_v22 = vadd.f32 %v377_v20, %v308_v15  ;;  %v1170_v24 = vmax.f32 %v374_v18, 0.0 }
  0xf9   : > { %v1167_v21 = vmax.f32 %v376_v19, 0.0  ;;  %394 = vrot.lane.b32.xlu1 %v1165_v17, %s1047_s14 }
  0xfa   : > { %v1173_v26 = vmax.f32 %v378_v22, 0.0 }
  0xfb   : > { %396 = vrot.lane.b32.xlu0 %v1167_v21, %s1047_s14 }
  0xfc   : > { %v381_v25 = vpop.f32.mrb[4].mxu0 }
  0xfd   : > { %v382_v27 = vadd.f32 %v381_v25, %v313_v23  ;;  %v383_v28 = vpop.f32.mrb[5].mxu0  ;;  %400 = vrot.lane.b32.xlu1 %v1170_v24, %s1047_s14 }
  0xfe   : > { %v384_v29 = vadd.f32 %v383_v28, %v313_v23  ;;  %v385_v30 = vpop.f32.mrb[6].mxu0 }
  0xff   : > { %v1176_v31 = vmax.f32 %v382_v27, 0.0  ;;  %v386_v32 = vpop.f32.mrb[7].mxu0  ;;  %402 = vrot.lane.b32.xlu0 %v1173_v26, %s1047_s14 }
 0x100   : > { %v1179_v33 = vmax.f32 %v384_v29, 0.0 }
 0x101   : > { %398 = vrot.lane.b32.xlu1 %v1176_v31, %s1047_s14  ;;  %v475_v34 = vpack.c.bf16 %v1176_v31, %v1167_v21 }
 0x102   : > { %v476_v35 = vpack.c.bf16 %v1179_v33, %v1173_v26 }
 0x103   : > { %404 = vrot.lane.b32.xlu0 %v1179_v33, %s1047_s14 }
 0x105   : > { %433 = vrot.lane.b32.xlu1 %v1165_v17, %s1048_s15 }
 0x107   : > { %435 = vrot.lane.b32.xlu0 %v1167_v21, %s1048_s15 }
 0x109   : > { %439 = vrot.lane.b32.xlu1 %v1170_v24, %s1048_s15 }
 0x10b   : > { %441 = vrot.lane.b32.xlu0 %v1173_v26, %s1048_s15 }
 0x10d   : > { %437 = vrot.lane.b32.xlu1 %v1176_v31, %s1048_s15  ;;  %v978_v31 = vld [vmem:[%s1402_s2] sm:$0xff]  }
 0x10f   : > { %443 = vrot.lane.b32.xlu0 %v1179_v33, %s1048_s15  ;;  %v979_v33 = vld [vmem:[%s1402_s2 + $0x8] ss:$0 sps:$4 sm:$0xff]   ;;  %s1358_s15 = scalar_lea.hbm %s1407_s7, %s928_s29 }
 0x111   : > { %486 = vperm.xlu1 %974, %v284_v36  }
 0x113   : > { %491 = vperm.xlu0 %973, %v285_v37  }
 0x115   : > { %496 = vperm.xlu1 %974, %v286_v38  }
 0x16b   : > { %v395_v42 = vpop.permute.xlu1 %394 }
 0x16d   : > { %v397_v46 = vpop.permute.xlu0 %396 }
 0x16f   : > { %v401_v48 = vpop.permute.xlu1 %400 }
 0x170   : > { %v409_v50 = vsel %vm408_vm2, %v395_v42, %v401_v48  ;;  %v412_v51 = vsel %vm408_vm2, %v401_v48, %v395_v42 }
 0x171   : > { %v403_v52 = vpop.permute.xlu0 %402  ;;  %v427_v55 = vmul.f32 %v420_v47, %v412_v51  ;;  %v428_v58 = vmul.f32 %v424_v49, %v409_v50 }
 0x172   : > { %v410_v53 = vsel %vm408_vm2, %v397_v46, %v403_v52  ;;  %v413_v54 = vsel %vm408_vm2, %v403_v52, %v397_v46 }
 0x173   : > { %v429_v56 = vmul.f32 %v420_v47, %v413_v54  ;;  %v399_v57 = vpop.permute.xlu1 %398  ;;  %v430_v59 = vmul.f32 %v424_v49, %v410_v53 }
 0x175   : > { %v405_v60 = vpop.permute.xlu0 %404  ;;  %v472_v61 = vpack.c.bf16 %v430_v59, %v428_v58  ;;  %v471_v62 = vpack.c.bf16 %v429_v56, %v427_v55 }
 0x176   : > { %v411_v63 = vsel %vm408_vm2, %v399_v57, %v405_v60  ;;  %v414_v1 = vsel %vm408_vm2, %v405_v60, %v399_v57 }
 0x177   : > { %v431_v2 = vmul.f32 %v420_v47, %v414_v1  ;;  %v432_v3 = vmul.f32 %v424_v49, %v411_v63  ;;  %521 = vmatprep.subr.bf16.mxu1 %v472_v61  ;;  %v434_v4 = vpop.permute.xlu1 %433  ;;  %v288_v63 = vld [vmem:[%s1405_s5 + $0x38] sm:$0xff]  ;;  %v289_v1 = vld [vmem:[%s1405_s5 + $0x40] sm:$0xff] }
 0x178   : > { %522 = vmatpush1.bf16.msra.mxu1 %v471_v62  ;;  %v287_v62 = vld [vmem:[%s1405_s5 + $0x30] sm:$0xff] }
 0x179   : > { %v436_v6 = vpop.permute.xlu0 %435  ;;  %v474_v7 = vpack.c.bf16 %v1170_v24, %v432_v3  ;;  %v473_v8 = vpack.c.bf16 %v1165_v17, %v431_v2  ;;  %v290_v2 = vld [vmem:[%s1405_s5 + $0x48] sm:$0xff] }
 0x17b   : > { %523 = vmatprep.subr.bf16.mxu1 %v474_v7  ;;  %v440_v11 = vpop.permute.xlu1 %439 }
 0x17c   : > { %v446_v12 = vsel %vm445_vm3, %v434_v4, %v440_v11  ;;  %v449_v13 = vsel %vm445_vm3, %v440_v11, %v434_v4  ;;  %524 = vmatpush1.bf16.msra.mxu1 %v473_v8  ;;  %v914_v4 = vld [vmem:[%s1406_s6 + $0x3] ss:$8 sm:$0x3] }
 0x17d   : > { %v442_v14 = vpop.permute.xlu0 %441  ;;  %525 = vmatprep.subr.bf16.mxu1 %v476_v35  ;;  %v465_v17 = vmul.f32 %v458_v9, %v446_v12  ;;  %v466_v18 = vmul.f32 %v462_v10, %v449_v13  ;;  %v607_v7 = vrot.slane %v914_v4, %v1206_v44 }
 0x17e   : > { %v447_v15 = vsel %vm445_vm3, %v436_v6, %v442_v14  ;;  %v450_v16 = vsel %vm445_vm3, %v442_v14, %v436_v6  ;;  %v603_v6 = vrot.slane %v914_v4, %v1204_v43 }
 0x17f   : > { %v467_v19 = vmul.f32 %v458_v9, %v447_v15  ;;  %v468_v20 = vmul.f32 %v462_v10, %v450_v16  ;;  %v438_v22 = vpop.permute.xlu1 %437 }
 0x180   : > { %526 = vmatpush1.bf16.msra.mxu1 %v475_v34 }
 0x181   : > { %v444_v23 = vpop.permute.xlu0 %443  ;;  %v478_v24 = vpack.c.bf16 %v468_v20, %v466_v18  ;;  %v477_v25 = vpack.c.bf16 %v467_v19, %v465_v17 }
 0x182   : > { %v448_v26 = vsel %vm445_vm3, %v438_v22, %v444_v23  ;;  %v451_v27 = vsel %vm445_vm3, %v444_v23, %v438_v22 }
 0x183   : > { %v469_v28 = vmul.f32 %v458_v9, %v448_v26  ;;  %v470_v29 = vmul.f32 %v462_v10, %v451_v27  ;;  %527 = vmatprep.subr.bf16.mxu1 %v478_v24 }
 0x184   : > { %528 = vmatpush1.bf16.msra.mxu1 %v477_v25 }
 0x185   : > { %v479_v30 = vpack.c.bf16 %v469_v28, %v469_v28  ;;  %v480_v32 = vpack.c.bf16 %v470_v29, %v470_v29  ;;  %v915_v28 = vld [vmem:[%s1406_s6 + $0x5] ss:$8 sm:$0x3] }
 0x187   : > { %911 = vmatprep.subr.msk.bf16.mxu1 %vm514_vm4, %v480_v32  ;;  %v516_v21 = vsel %vm514_vm4, %v479_v30, 0 }
 0x188   : > { %530 = vmatpush1.bf16.msra.mxu1 %v516_v21  ;;  %v641_v21 = vrot.slane %v915_v28, %v1204_v43 }
 0x18b   : > { %912 = vmatmul.mubr.msk.bf16.vlgmr.msra.gmra.mrb[0].mxu1 %vm507_vm5, %v978_v31  ;;  %v645_v31 = vrot.slane %v915_v28, %v1206_v44 }
 0x18c   : > { %563 = vmatprep.mubr.bf16.mxu1 %v1046_v0 }
 0x190   : > { %v487_v34 = vpop.permute.xlu1 %486 }
 0x192   : > { %v492_v38 = vpop.permute.xlu0 %491 }
 0x193   : > { %913 = vmatmul.mubr.msk.bf16.gmra.mrb[4].mxu1 %vm507_vm5, %v979_v33 }
 0x194   : > { %811 = vmatprep.mubr.bf16.mxu1 %v1046_v0  ;;  %v497_v50 = vpop.permute.xlu1 %496 }
 0x25e   : > { %v555_v35 = vpop.f32.mrb[0].mxu1 }
 0x25f   : > { %v556_v36 = vadd.f32 %v555_v35, %v487_v34  ;;  %v557_v37 = vpop.f32.mrb[1].mxu1 }
 0x260   : > { %v559_v39 = vpop.f32.mrb[2].mxu1  ;;  %v558_v42 = vadd.f32 %v557_v37, %v487_v34 }
 0x261   : > { %v1261_v40 = vmax.f32 %v556_v36, 0.0  ;;  %v560_v45 = vadd.f32 %v559_v39, %v492_v38  ;;  %v561_v46 = vpop.f32.mrb[3].mxu1 }
 0x262   : > { %v562_v48 = vadd.f32 %v561_v46, %v492_v38  ;;  %v1266_v49 = vmax.f32 %v558_v42, 0.0 }
 0x263   : > { %v1263_v47 = vmax.f32 %v560_v45, 0.0  ;;  %578 = vrot.lane.b32.xlu0 %v1261_v40, %s1049_s16 }
 0x264   : > { %v1269_v52 = vmax.f32 %v562_v48, 0.0 }
 0x265   : > { %580 = vrot.lane.b32.xlu1 %v1263_v47, %s1049_s16 }
 0x266   : > { %v565_v51 = vpop.f32.mrb[4].mxu1 }
 0x267   : > { %v566_v53 = vadd.f32 %v565_v51, %v497_v50  ;;  %v567_v54 = vpop.f32.mrb[5].mxu1  ;;  %584 = vrot.lane.b32.xlu0 %v1266_v49, %s1049_s16 }
 0x268   : > { %v568_v55 = vadd.f32 %v567_v54, %v497_v50  ;;  %v569_v56 = vpop.f32.mrb[6].mxu1 }
 0x269   : > { %v1272_v57 = vmax.f32 %v566_v53, 0.0  ;;  %v570_v58 = vpop.f32.mrb[7].mxu1  ;;  %586 = vrot.lane.b32.xlu1 %v1269_v52, %s1049_s16 }
 0x26a   : > { %v577_v59 = vmax.f32 %v568_v55, 0.0  ;;  %v980_v55 = vld [vmem:[%s1403_s3] sm:$0xff]  }
 0x26b   : > { %v658_v60 = vpack.c.bf16 %v1272_v57, %v1263_v47  ;;  %582 = vrot.lane.b32.xlu0 %v1272_v57, %s1049_s16 }
 0x26c   : > { %v659_v61 = vpack.c.bf16 %v577_v59, %v1269_v52 }
 0x26d   : > { %588 = vrot.lane.b32.xlu1 %v577_v59, %s1049_s16  ;;  %s982_s16 = scalar_lea.vmem %s1360_s9, 256 }
 0x26e   : > { %p983_p11 = scmp.ne.s32.totalorder %s1360_s9, %s982_s16 }
 0x26f   : > { %616 = vrot.lane.b32.xlu0 %v1261_v40, %s1050_s17 }
 0x270   : > { %p984_p12 = pnand %p983_p11, %p1130_p5 }
 0x271   : > { %618 = vrot.lane.b32.xlu1 %v1263_v47, %s1050_s17 }
 0x272   : > { %p985_p13 = pneg %p984_p12 }
 0x273   : > { %622 = vrot.lane.b32.xlu0 %v1266_v49, %s1050_s17 }
 0x275   : > { %624 = vrot.lane.b32.xlu1 %v1269_v52, %s1050_s17 }
 0x277   : > { %620 = vrot.lane.b32.xlu0 %v1272_v57, %s1050_s17 }
 0x279   : > { %626 = vrot.lane.b32.xlu1 %v577_v59, %s1050_s17  ;;  %s1051_s17 = smov [#allocation2]  }
 0x27a   : > { %s986_s18 = sshll.u32 %s1051_s17, 4  ;;  %s987_s18 = int_to_ptr.vmem [resolvable:$false] %s986_s18 }
 0x27b   : > { %669 = vperm.xlu0 %973, %v287_v62   ;;  %s988_s19 = scalar_lea.vmem %s987_s18, 512  ;;  %p989_p0 = scmp.lt.s32.totalorder %s1360_s9, %s987_s18 }
 0x27c   : > { %p990_p1 = scmp.lt.s32.totalorder %s988_s19, %s982_s16 }
 0x27d   : > { %674 = vperm.xlu1 %974, %v288_v63  }
 0x27e   : > { %p991_p2 = por %p990_p1, %p989_p0 }
 0x27f   : > { %679 = vperm.xlu0 %973, %v289_v1  }
 0x280   : > { %p992_p3 = pnand %p991_p2, %p985_p13 }
 0x281   : > { %766 = vperm.xlu1 %974, %v290_v2  }
 0x2d5   : > { %v579_v3 = vpop.permute.xlu0 %578 }
 0x2d7   : > { %v581_v5 = vpop.permute.xlu1 %580 }
 0x2d9   : > { %v585_v8 = vpop.permute.xlu0 %584 }
 0x2da   : > { %v591_v9 = vsel %vm590_vm6, %v579_v3, %v585_v8  ;;  %v594_v10 = vsel %vm590_vm6, %v585_v8, %v579_v3 }
 0x2db   : > { %v587_v11 = vpop.permute.xlu1 %586  ;;  %v610_v14 = vmul.f32 %v603_v6, %v594_v10  ;;  %v611_v15 = vmul.f32 %v607_v7, %v591_v9 }
 0x2dc   : > { %v592_v12 = vsel %vm590_vm6, %v581_v5, %v587_v11  ;;  %v595_v13 = vsel %vm590_vm6, %v587_v11, %v581_v5 }
 0x2dd   : > { %v612_v16 = vmul.f32 %v603_v6, %v595_v13  ;;  %v613_v17 = vmul.f32 %v607_v7, %v592_v12  ;;  %v583_v18 = vpop.permute.xlu0 %582 }
 0x2df   : > { %v654_v19 = vpack.c.bf16 %v612_v16, %v610_v14  ;;  %v589_v20 = vpop.permute.xlu1 %588  ;;  %v655_v22 = vpack.c.bf16 %v613_v17, %v611_v15 }
 0x2e0   : > { %v593_v23 = vsel %vm590_vm6, %v583_v18, %v589_v20  ;;  %v596_v24 = vsel %vm590_vm6, %v589_v20, %v583_v18  ;;  %v759_v20 = vld [vmem:[%s1404_s4] sm:$0xf] }
 0x2e1   : > { %v614_v25 = vmul.f32 %v603_v6, %v596_v24  ;;  %v615_v26 = vmul.f32 %v607_v7, %v593_v23  ;;  %v617_v27 = vpop.permute.xlu0 %616  ;;  %702 = vmatprep.subr.bf16.mxu0 %v655_v22 }
 0x2e2   : > { %703 = vmatpush1.bf16.msra.mxu0 %v654_v19 }
 0x2e3   : > { %v656_v29 = vpack.c.bf16 %v1261_v40, %v614_v25  ;;  %v619_v30 = vpop.permute.xlu1 %618  ;;  %v657_v32 = vpack.c.bf16 %v1266_v49, %v615_v26 }
 0x2e5   : > { %v623_v33 = vpop.permute.xlu0 %622  ;;  %704 = vmatprep.subr.bf16.mxu0 %v657_v32 }
 0x2e6   : > { %v629_v34 = vsel %vm628_vm7, %v617_v27, %v623_v33  ;;  %v632_v35 = vsel %vm628_vm7, %v623_v33, %v617_v27  ;;  %705 = vmatpush1.bf16.msra.mxu0 %v656_v29 }
 0x2e7   : > { %706 = vmatprep.subr.bf16.mxu0 %v659_v61  ;;  %v625_v36 = vpop.permute.xlu1 %624  ;;  %v648_v43 = vmul.f32 %v641_v21, %v629_v34  ;;  %v649_v39 = vmul.f32 %v645_v31, %v632_v35 }
 0x2e8   : > { %v630_v37 = vsel %vm628_vm7, %v619_v30, %v625_v36  ;;  %v633_v38 = vsel %vm628_vm7, %v625_v36, %v619_v30 }
 0x2e9   : > { %v650_v44 = vmul.f32 %v641_v21, %v630_v37  ;;  %v651_v40 = vmul.f32 %v645_v31, %v633_v38  ;;  %v621_v45 = vpop.permute.xlu0 %620 }
 0x2ea   : > { %707 = vmatpush1.bf16.msra.mxu0 %v658_v60 }
 0x2eb   : > { %v660_v42 = vpack.c.bf16 %v650_v44, %v648_v43  ;;  %v627_v46 = vpop.permute.xlu1 %626  ;;  %v661_v48 = vpack.c.bf16 %v651_v40, %v649_v39 }
 0x2ec   : > { %v631_v49 = vsel %vm628_vm7, %v621_v45, %v627_v46  ;;  %v634_v50 = vsel %vm628_vm7, %v627_v46, %v621_v45 }
 0x2ed   : > { %v652_v51 = vmul.f32 %v641_v21, %v631_v49  ;;  %v653_v52 = vmul.f32 %v645_v31, %v634_v50  ;;  %708 = vmatprep.subr.bf16.mxu0 %v661_v48 }
 0x2ee   : > { %709 = vmatpush1.bf16.msra.mxu0 %v660_v42 }
 0x2ef   : > { %v662_v53 = vpack.c.bf16 %v652_v51, %v652_v51  ;;  %v663_v54 = vpack.c.bf16 %v653_v52, %v653_v52 }
 0x2f1   : > { %918 = vmatprep.subr.msk.bf16.mxu0 %vm514_vm4, %v663_v54  ;;  %v697_v47 = vsel %vm514_vm4, %v662_v53, 0 }
 0x2f2   : > { %711 = vmatpush1.bf16.msra.mxu0 %v697_v47 }
 0x2f5   : > { %919 = vmatmul.mubr.msk.bf16.vlgmr.msra.gmra.mrb[8].mxu0 %vm507_vm5, %v980_v55 }
 0x2f6   : > { %744 = vmatprep.mubr.bf16.mxu0 %v1046_v0 }
 0x2fa   : > { %v670_v56 = vpop.permute.xlu0 %669 }
 0x2fc   : > { %v675_v60 = vpop.permute.xlu1 %674 }
 0x2fd   : > { %920 = vmatmul.mubr.msk.bf16.gmra.mrb[12].mxu0 %vm507_vm5, %v981_v41 }
 0x2fe   : > { %v680_v7 = vpop.permute.xlu0 %679 }
 0x300   : > { %v767_v22 = vpop.permute.xlu1 %766 }
 0x3c8   : > { %v736_v57 = vpop.f32.mrb[8].mxu0 }
 0x3c9   : > { %v737_v58 = vadd.f32 %v736_v57, %v670_v56  ;;  %v738_v59 = vpop.f32.mrb[9].mxu0 }
 0x3ca   : > { %v739_v61 = vadd.f32 %v738_v59, %v670_v56  ;;  %v740_v62 = vpop.f32.mrb[10].mxu0 }
 0x3cb   : > { %v741_v63 = vadd.f32 %v740_v62, %v675_v60  ;;  %v742_v1 = vpop.f32.mrb[11].mxu0  ;;  %v753_v3 = vmax.f32 %v737_v58, 0.0 }
 0x3cc   : > { %v743_v2 = vadd.f32 %v742_v1, %v675_v60  ;;  %v754_v5 = vmax.f32 %v739_v61, 0.0 }
 0x3cd   : > { %v755_v4 = vmax.f32 %v741_v63, 0.0 }
 0x3ce   : > { %v756_v0 = vmax.f32 %v743_v2, 0.0 }
 0x3cf   : > { %v760_v6 = vpack.c.bf16 %v755_v4, %v753_v3 }
 0x3d0   : > { %v761_v8 = vpack.c.bf16 %v756_v0, %v754_v5  ;;  %v746_v9 = vpop.f32.mrb[12].mxu0 }
 0x3d1   : > { %v747_v10 = vadd.f32 %v746_v9, %v680_v7  ;;  %v748_v11 = vpop.f32.mrb[13].mxu0 }
 0x3d2   : > { %v749_v12 = vadd.f32 %v748_v11, %v680_v7  ;;  %v750_v13 = vpop.f32.mrb[14].mxu0  ;;  %779 = vmatprep.subr.bf16.mxu1 %v761_v8 }
 0x3d3   : > { %v757_v14 = vmax.f32 %v747_v10, 0.0  ;;  %v751_v15 = vpop.f32.mrb[15].mxu0  ;;  %780 = vmatpush1.bf16.msra.mxu1 %v760_v6 }
 0x3d4   : > { %v758_v16 = vmax.f32 %v749_v12, 0.0 }
 0x3d5   : > { %v762_v17 = vpack.c.bf16 %v757_v14, %v757_v14 }
 0x3d6   : > { %v763_v18 = vpack.c.bf16 %v758_v16, %v758_v16 }
 0x3d7   : > { %v774_v19 = vsel %vm514_vm4, %v762_v17, 0 }
 0x3d8   : > { %921 = vmatprep.subr.msk.bf16.mxu1 %vm514_vm4, %v763_v18 }
 0x3d9   : > { %782 = vmatpush1.bf16.msra.mxu1 %v774_v19 }
 0x3dc   : > { %922 = vmatmul.mubr.msk.bf16.vlgmr.msra.gmra.mrb[8].mxu1 %vm769_vm8, %v759_v20 }
 0x4af   : > { %v813_v23 = vpop.f32.mrb[8].mxu1 }
 0x4b0   : > { %v814_v24 = vadd.f32 %v813_v23, %v767_v22  ;;  %v815_v25 = vpop.f32.mrb[9].mxu1 }
 0x4b1   : > { %v816_v26 = vadd.f32 %v815_v25, %v767_v22  ;;  %v817_v27 = vpop.f32.mrb[10].mxu1 }
 0x4b2   : > { %820 = vst [vmem:[%s272_s8] sm:$0xff] %v814_v24  ;;  %v818_v28 = vpop.f32.mrb[11].mxu1 }
 0x4b3   : > { %821 = vst [vmem:[%s272_s8 + $0x8] sm:$0xff] %v816_v26 }
 0x4b4   : > { %995 = shalt.err (!%p992_p3)
}
 0x4b5   : > { %s996_s20 = scalar_lea.hbm %s1358_s15, 256  ;;  %s1000_s23 = scalar_lea.hbm %s1407_s7, 512 }
 0x4b6   : > { %p997_p4 = scmp.ne.s32.totalorder %s1358_s15, %s996_s20  ;;  %p1001_p9 = scmp.lt.u32.totalorder %s1358_s15, %s1407_s7 }
 0x4b7   : > { %p1002_p10 = scmp.lt.u32.totalorder %s1000_s23, %s996_s20  ;;  %p1004_p12 = scmp.lt.u32.totalorder %s996_s20, %s1358_s15 }
 0x4b8   : > { %p998_p7 = pnand %p997_p4, %p1130_p5 }
 0x4b9   : > { %p1003_p11 = por %p1002_p10, %p1001_p9 }
 0x4ba   : > { %p999_p8 = pneg %p998_p7 }
 0x4bb   : > { %p1005_p13 = por %p1004_p12, %p1003_p11 }
 0x4bd   : > { %p1006_p0 = pnand %p1005_p13, %p999_p8 }
 0x4bf   : > { %1009 = shalt.err (!%p1006_p0)
}
 0x4c0   : > { %929 = dma.vmem_to_hbm [thread:$0]  (%p1130_p5), %s1360_s9, 256, %s1358_s15, %s823_s28  }
 0x4c1 PF: > { %p935_p1 = scmp.ge.s32.totalorder %s1044_s27, 2  ;;  %s849_s13 = sand.u32 1, %s1032_s24  }
 0x4c2   : > { %s850_s14 = scalar_lea.sflag [#allocation3], %s849_s13 }
 0x4c3   : > { %p932_p2 = pnand %p935_p1, %p1134_p6 }
 0x4c5   : > { %1027 = dma.done.wait (!%p932_p2), %s850_s14, 256  }
 0x4c6   : > { %1029 = vsyncadd (!%p932_p2), %s850_s14, 4294967040  ;;  %p17_p3 = scmp.ge.s32.totalorder %s1117_s30, 4   ;;  %s1410_s24 = smov %s1036_s25 }
 0x4c7   : > { %s1411_s25 = smov %s1040_s26  ;;  %s1412_s26 = smov %s1128_s10 }
 0x4c8   : > { %s1413_s27 = smov %s1117_s30  ;;  %19 = sbr.rel (!%p17_p3) target bundleno = 3 (0x3), region = 86 }
 0x4cf   :  { %855 = vsyncpa [#allocation3], 1 }
 0x4d0   :  { %857 = vsyncpa [#allocation3 + $0x1], 1 }

</bundles_post_ra>
